<compile_context>
chip_gen: v7x
topology: tpu7x:2x2x1
jax: 0.10.0
libtpu: 0.0.40
codegen_flags: <defaults>
</compile_context>

<pallas_src>
import jax
import jax.numpy as jnp
from jax.experimental import pallas as pl
from jax.experimental.pallas import tpu as pltpu


def _make_kernel(*, n_k, weight_resident, t_k, use_scratch):
    """Builds the kernel body: y = sum_k W(:, k-slab) @ X(k-slab, :) + bias."""

    def kernel(w_ref, b_ref, x_ref, o_ref, *scratch):
        k = pl.program_id(3)

        if weight_resident:
            off = pl.multiple_of(k * t_k, t_k)
            w = w_ref[:, pl.ds(off, t_k)]
        else:
            w = w_ref[...]

        part = jnp.dot(w, x_ref[...], preferred_element_type=jnp.float32)

        if n_k == 1:
            # Single reduction step: fused bias add + cast, straight to output.
            o_ref[...] = (part + b_ref[...]).astype(o_ref.dtype)
            return

        # Multi-step reduction. For f32 outputs the output block itself is the
        # accumulator (its block index is k-invariant, so it stays resident).
        acc_ref = scratch[0] if use_scratch else o_ref

        @pl.when(k == 0)
        def _():
            acc_ref[...] = part + b_ref[...]

        @pl.when(k > 0)
        def _():
            acc_ref[...] += part

        if use_scratch:
            @pl.when(k == pl.num_programs(3) - 1)
            def _():
                o_ref[...] = acc_ref[...].astype(o_ref.dtype)

    return kernel


def _largest_divisor(n, cap, step):
    """Largest multiple of `step` that divides n and is <= cap (0 if none)."""
    b = (min(cap, n) // step) * step
    while b >= step:
        if n % b == 0:
            return b
        b -= step
    return 0


def _pick_blk_hw(hw, t_hw, want_multi):
    """Lane (spatial) tile: lane-dense (multiple of 128) or the full HW dim."""
    # Whole-HW block (always a legal block shape: equals the full array dim).
    if hw <= t_hw and not (want_multi and hw >= 256):
        return hw
    cap = min(t_hw, hw)
    if want_multi:
        cap = min(cap, hw // 2)          # expose >= 2 grid steps
    cap = max(cap, 128)
    if cap >= hw:
        return hw
    # Prefer a multiple of 128 that divides HW: no masked trailing block.
    b = (cap // 128) * 128
    while b >= 128:
        if hw % b == 0:
            return b
        b -= 128
    # Fall back: lane-dense blocks with one masked trailing block.
    return (cap // 128) * 128


def linear_1x1(x_nchw, weight, bias=None, *, t_hw=1024, t_k=512, t_co=512):
    """1x1 Conv2d (pointwise linear over channels) as a Pallas TPU kernel.

    x_nchw: (N, C_in, H, W)
    weight: (C_out, C_in)   -- Conv2d weight (C_out, C_in, 1, 1) squeezed
    bias:   (C_out,) or None
    returns (N, C_out, H, W), same dtype as x.
    """
    N, C_in, H, W = x_nchw.shape
    C_out = weight.shape[0]
    HW = H * W
    out_dtype = x_nchw.dtype
    xsize = jnp.dtype(x_nchw.dtype).itemsize
    wsize = jnp.dtype(weight.dtype).itemsize
    osize = jnp.dtype(out_dtype).itemsize

    if bias is None:
        bias = jnp.zeros((C_out,), jnp.float32)

    x3 = x_nchw.reshape(N, C_in, HW)            # free view: HW contiguous in NCHW
    b2 = bias.reshape(C_out, 1).astype(jnp.float32)

    # ---- per-generation VMEM budget (v5e/v6e: 128 MiB physical, v7x: 64) ----
    try:
        phys_vmem = pltpu.get_tpu_info().vmem_capacity_bytes
    except Exception:
        phys_vmem = 64 * 1024 * 1024            # conservative (v7x per-core)
    vmem_limit = min(int(phys_vmem * 3 // 4), 100 * 1024 * 1024)
    budget = int(vmem_limit * 0.85)

    # ---- C_out tiling (keeps acc/out blocks viable on v7x's 64 MiB VMEM) ----
    blk_co = C_out if C_out <= t_co else t_co
    n_co = pl.cdiv(C_out, blk_co)

    # ---- K (C_in) tiling: tiles must be multiples of 128 that divide C_in
    # (weight lane dim stays (8,128)-legal; never read OOB along a reduction).
    tk, n_k = C_in, 1
    if C_in >= 2 * t_k:
        cand = _largest_divisor(C_in, t_k, 128)
        if cand >= 128:
            tk, n_k = cand, C_in // cand

    # Keep the whole weight resident in VMEM across the K loop when it fits:
    # avoids re-DMAing it for every (n, hw) tile (direct HBM-bandwidth win).
    weight_resident = (n_k > 1) and (n_co == 1) and (
        C_out * C_in * wsize <= budget // 4)

    # f32 outputs accumulate into the resident output block; non-f32 outputs
    # need a separate f32 scratch accumulator.
    use_scratch = (n_k > 1) and (out_dtype != jnp.float32)

    # ---- spatial (lane) tile; expose >= 2 parallel steps when N*n_co == 1 ----
    want_multi = (N == 1 and n_co == 1)
    blk_hw = _pick_blk_hw(HW, t_hw, want_multi)

    def _resident_bytes(bhw):
        k_blk = tk if n_k > 1 else C_in
        if weight_resident:
            w_bytes = C_out * C_in * wsize
        else:
            w_bufs = 1 if (n_co == 1 and n_k == 1) else 2
            w_bytes = w_bufs * blk_co * k_blk * wsize
        total = w_bytes
        total += 2 * k_blk * bhw * xsize        # x, double-buffered
        total += 2 * blk_co * bhw * osize       # out, double-buffered
        if use_scratch:
            total += blk_co * bhw * 4
        total += 2 * blk_co * 4                 # bias
        return total

    while blk_hw > 128 and _resident_bytes(blk_hw) > budget:
        blk_hw = max(128, ((blk_hw // 2 + 127) // 128) * 128)

    n_hw = pl.cdiv(HW, blk_hw)

    # ---- BlockSpecs ----
    if weight_resident or n_k == 1:
        w_block = (blk_co, C_in)
        w_index = lambda n, co, j, k: (co, 0)
    else:
        w_block = (blk_co, tk)
        w_index = lambda n, co, j, k: (co, k)
    w_index_const = (n_co == 1) and (weight_resident or n_k == 1)
    w_spec = (pl.BlockSpec(w_block, w_index, pipeline_mode=pl.Buffered(1))
              if w_index_const else pl.BlockSpec(w_block, w_index))

    b_index = lambda n, co, j, k: (co, 0)
    b_spec = (pl.BlockSpec((blk_co, 1), b_index, pipeline_mode=pl.Buffered(1))
              if n_co == 1 else pl.BlockSpec((blk_co, 1), b_index))

    if n_k > 1:
        x_spec = pl.BlockSpec((None, tk, blk_hw), lambda n, co, j, k: (n, k, j))
    else:
        x_spec = pl.BlockSpec((None, C_in, blk_hw),
                              lambda n, co, j, k: (n, 0, j))

    o_spec = pl.BlockSpec((None, blk_co, blk_hw),
                          lambda n, co, j, k: (n, co, j))

    kernel = _make_kernel(n_k=n_k, weight_resident=weight_resident,
                          t_k=tk, use_scratch=use_scratch)
    scratch = ([pltpu.VMEM((blk_co, blk_hw), jnp.float32)]
               if use_scratch else [])

    out3 = pl.pallas_call(
        kernel,
        out_shape=jax.ShapeDtypeStruct((N, C_out, HW), out_dtype),
        grid_spec=pltpu.PrefetchScalarGridSpec(
            num_scalar_prefetch=0,
            grid=(N, n_co, n_hw, n_k),           # reduction axis last
            in_specs=[w_spec, b_spec, x_spec],
            out_specs=o_spec,
            scratch_shapes=scratch,
        ),
        compiler_params=pltpu.CompilerParams(
            dimension_semantics=("parallel", "parallel", "parallel",
                                 "arbitrary"),
            vmem_limit_bytes=vmem_limit,
        ),
    )(weight, b2, x3)

    # TODO(synk): HW < 128 shapes are inherently lane-sparse in this NCHW-native
    # layout; a dedicated small-HW path (NHWC-style lane packing) could help.
    return out3.reshape(N, C_out, H, W)


if __name__ == "__main__":
    key = jax.random.PRNGKey(0)
    keys = jax.random.split(key, 9)

    # --- check 1: module-sized problem (single K step, fused bias path) ---
    N, C_in, C_out, H, W = 2, 4, 8, 16, 16
    x = jax.random.normal(keys[0], (N, C_in, H, W), dtype=jnp.float32)
    w = jax.random.normal(keys[1], (C_out, C_in), dtype=jnp.float32) * 0.1
    b = jax.random.normal(keys[2], (C_out,), dtype=jnp.float32) * 0.1
    y = jax.block_until_ready(linear_1x1(x, w, b))
    y_ref = jnp.einsum("nchw,oc->nohw", x, w,
                       precision=jax.lax.Precision.HIGHEST) \
        + b[None, :, None, None]
    assert y.shape == (N, C_out, H, W)
    assert jnp.allclose(y, y_ref, atol=1e-4, rtol=1e-4)

    # --- check 2: K-tiled path, resident weight, f32 accumulate-into-output ---
    N2, C_in2, C_out2, H2, W2 = 1, 256, 16, 8, 8
    x2 = jax.random.normal(keys[3], (N2, C_in2, H2, W2), dtype=jnp.float32)
    w2 = jax.random.normal(keys[4], (C_out2, C_in2), dtype=jnp.float32) * 0.1
    b2v = jax.random.normal(keys[5], (C_out2,), dtype=jnp.float32) * 0.1
    y2 = jax.block_until_ready(linear_1x1(x2, w2, b2v, t_k=128))
    y2_ref = jnp.einsum("nchw,oc->nohw", x2, w2,
                        precision=jax.lax.Precision.HIGHEST) \
        + b2v[None, :, None, None]
    assert jnp.allclose(y2, y2_ref, atol=1e-3, rtol=1e-3)

    # --- check 3: bf16 inputs, K-tiled path with f32 scratch accumulator ---
    x3f = jax.random.normal(keys[6], (1, 256, 8, 8), dtype=jnp.float32)
    w3f = jax.random.normal(keys[7], (16, 256), dtype=jnp.float32) * 0.1
    b3f = jax.random.normal(keys[8], (16,), dtype=jnp.float32) * 0.1
    y3 = jax.block_until_ready(
        linear_1x1(x3f.astype(jnp.bfloat16), w3f.astype(jnp.bfloat16),
                   b3f, t_k=128))
    y3_ref = jnp.einsum("nchw,oc->nohw",
                        x3f.astype(jnp.bfloat16).astype(jnp.float32),
                        w3f.astype(jnp.bfloat16).astype(jnp.float32),
                        precision=jax.lax.Precision.HIGHEST) \
        + b3f[None, :, None, None]
    assert y3.dtype == jnp.bfloat16
    assert jnp.allclose(y3.astype(jnp.float32), y3_ref, atol=5e-2, rtol=5e-2)

    print("KERNEL_OK")
</pallas_src>

<mosaic_0001>
module attributes {stable_mosaic.version = 11 : i64} {
  func.func @kernel(%arg0: i32, %arg1: i32, %arg2: i32, %arg3: i32, %arg4: memref<8x4xf32, #tpu.memory_space<vmem>>, %arg5: memref<8x1xf32, #tpu.memory_space<vmem>>, %arg6: memref<1x4x256xf32, #tpu.memory_space<vmem>>, %arg7: memref<1x8x256xf32, #tpu.memory_space<vmem>>) attributes {dimension_semantics = [#tpu.dimension_semantics<parallel>, #tpu.dimension_semantics<parallel>, #tpu.dimension_semantics<parallel>, #tpu.dimension_semantics<arbitrary>], iteration_bounds = array<i64: 2, 1, 1, 1>, scalar_prefetch = 0 : i64, scratch_operands = 0 : i64, tpu.core_type = #tpu.core_type<tc>, window_params = [{pipeline_mode = #tpu.pipeline_mode<synchronous>, transform_indices = @transform_0, window_bounds = array<i64: 8, 4>}, {pipeline_mode = #tpu.pipeline_mode<synchronous>, transform_indices = @transform_1, window_bounds = array<i64: 8, 1>}, {transform_indices = @transform_2, window_bounds = array<i64: 1, 4, 256>}, {transform_indices = @transform_3, window_bounds = array<i64: 1, 8, 256>}]} {
    %c0 = arith.constant 0 : index
    %c0_0 = arith.constant 0 : index
    %0 = vector.load %arg4[%c0, %c0_0] : memref<8x4xf32, #tpu.memory_space<vmem>>, vector<8x4xf32>
    %c0_1 = arith.constant 0 : index
    %c0_2 = arith.constant 0 : index
    %c0_3 = arith.constant 0 : index
    %1 = vector.load %arg6[%c0_1, %c0_2, %c0_3] : memref<1x4x256xf32, #tpu.memory_space<vmem>>, vector<1x4x256xf32>
    %2 = vector.shape_cast %1 : vector<1x4x256xf32> to vector<4x256xf32>
    %cst = arith.constant dense<0.000000e+00> : vector<8x256xf32>
    %3 = tpu.matmul %0, %2, %cst {dimension_numbers = #tpu.dot_dimension_numbers<[1], [0], [0], [1], [0, 0, 1, 1], [], []>} : vector<8x4xf32>, vector<4x256xf32>, vector<8x256xf32> -> vector<8x256xf32>
    %c0_4 = arith.constant 0 : index
    %c0_5 = arith.constant 0 : index
    %4 = vector.load %arg5[%c0_4, %c0_5] : memref<8x1xf32, #tpu.memory_space<vmem>>, vector<8x1xf32>
    %5 = vector.broadcast %4 : vector<8x1xf32> to vector<8x256xf32>
    %6 = arith.addf %3, %5 : vector<8x256xf32>
    %c0_6 = arith.constant 0 : index
    %c0_7 = arith.constant 0 : index
    %c0_8 = arith.constant 0 : index
    %7 = vector.load %arg7[%c0_6, %c0_7, %c0_8] : memref<1x8x256xf32, #tpu.memory_space<vmem>>, vector<1x8x256xf32>
    %8 = vector.shape_cast %7 : vector<1x8x256xf32> to vector<8x256xf32>
    %9 = vector.shape_cast %6 : vector<8x256xf32> to vector<1x8x256xf32>
    tpu.vector_store %arg7[%c0_6, %c0_7, %c0_8], %9 {strides = array<i32>} : memref<1x8x256xf32, #tpu.memory_space<vmem>>, vector<1x8x256xf32>,
    return
  }
  func.func @transform_0(%arg0: i32, %arg1: i32, %arg2: i32, %arg3: i32) -> (i32, i32) {
    %c0_i32 = arith.constant 0 : i32
    %c0_i32_0 = arith.constant 0 : i32
    return %arg1, %c0_i32 : i32, i32
  }
  func.func @transform_1(%arg0: i32, %arg1: i32, %arg2: i32, %arg3: i32) -> (i32, i32) {
    %c0_i32 = arith.constant 0 : i32
    %c0_i32_0 = arith.constant 0 : i32
    return %arg1, %c0_i32 : i32, i32
  }
  func.func @transform_2(%arg0: i32, %arg1: i32, %arg2: i32, %arg3: i32) -> (i32, i32, i32) {
    %c0_i32 = arith.constant 0 : i32
    %c0_i32_0 = arith.constant 0 : i32
    return %arg0, %c0_i32, %arg2 : i32, i32, i32
  }
  func.func @transform_3(%arg0: i32, %arg1: i32, %arg2: i32, %arg3: i32) -> (i32, i32, i32) {
    %c0_i32 = arith.constant 0 : i32
    return %arg0, %arg1, %arg2 : i32, i32, i32
  }
}

</mosaic_0001>

<bundles_post_ra>
// kernel: tpu_custom_call.1
= control target key start
LH: loop header
LB: loop body
LE: loop exit
PB: predicated region body
PF: predicated region fallthrough
CT: control target
= control target key end

     0   :  { %8 = vsyncpa [#allocation3], 0  ;;  %s772_s0 = inlined_call_operand.vmem [shape: f32[8,4], index: 0, kind: input, shape index: {}]   ;;  %s773_s1 = inlined_call_operand.vmem [shape: f32[8,1], index: 1, kind: input, shape index: {}]   ;;  %s774_s2 = inlined_call_operand.vmem [shape: f32[2,4,256], index: 2, kind: input, shape index: {}]   ;;  %s775_s3 = inlined_call_operand.hbm [shape: f32[2,8,256], index: 3, kind: output, shape index: {}]  }
   0x1   :  { %10 = vsyncpa [#allocation3 + $0x1], 0  ;;  %s654_s12 = smov 0   ;;  %s656_s13 = smov 0  }
   0x2   :  { %s658_s14 = smov 0   ;;  %s660_s15 = smov 0  }
   0x3   :  { %s662_s16 = smov 0   ;;  %s664_s17 = smov 0  }
   0x4 LB: > { %s472_s18 = sadd.s32 4294967295, %s629_s17   ;;  %s473_s19 = sadd.s32 4294967294, %s629_s17   ;;  %s629_s17 = sphi %s664_s17, %s16_s17   ;;  %s625_s16 = sphi %s662_s16, %s782_s16   ;;  %s621_s15 = sphi %s660_s15, %s781_s15   ;;  %s617_s14 = sphi %s658_s14, %s780_s14   ;;  %s613_s13 = sphi %s656_s13, %s779_s13   ;;  %s609_s12 = sphi %s654_s12, %s778_s12  }
   0x5   : > { %s42_s20 = sadd.s32 1, %s625_s16  ;;  %s133_s21 = sadd.s32 1, %s617_s14 }
   0x6   : > { %p44_p0 = scmp.ge.s32.totalorder %s42_s20, 2  ;;  %p143_p1 = scmp.ne.s32.totalorder %s617_s14, %s613_s13 }
   0x7   : > { %p144_p2 = scmp.eq.s32.totalorder %s472_s18, 1  ;;  %p149_p3 = scmp.ne.s32.totalorder %s613_s13, %s609_s12 }
   0x8   : > { %s784_s20 = smov (%p44_p0, %s42_s20), 0  ;;  %p150_p5 = scmp.eq.s32.totalorder %s473_s19, 1 }
   0x9   : > { %p694_p4 = por %p144_p2, %p143_p1  ;;  %s126_s23 = ssub.s32 %s625_s16, %s784_s20 }
   0xa   : > { %p478_p6 = scmp.ge.s32.totalorder %s629_s17, 1  ;;  %p131_p7 = scmp.eq.s32.totalorder %s126_s23, 0 }
   0xb   : > { %p701_p8 = por %p150_p5, %p149_p3  ;;  %p195_p9 = scmp.lt.s32.totalorder %s629_s17, 3 }
   0xc   : > { %s707_s25 = scalar_select %p131_p7, %s617_s14, %s133_s21  }
   0xd   : > { %p196_p10 = pnand %p478_p6, %p195_p9 }
   0xe   : > { %p240_p11 = scmp.lt.s32.totalorder (!%p196_p10), %s621_s15, 1  ;;  %v631_v0 = vmov (!%p196_p10), 0.0   ;;  %v632_v1 = vmov (!%p196_p10), 0   ;;  %v252_v2 = vld [vmem:[%s773_s1] sm:$0xff] (!%p196_p10)  ;;  %vm264_vm0 = vcmask (!%p196_p10), 1043456   ;;  %vm260_vm1 = vcmask (!%p196_p10), 31744  }
   0xf   : > { %199 = sbr.rel (%p196_p10) target bundleno = 260 (0x104), region = 32  ;;  %333 = vmatprep.mubr.f32.mxu0 (!%p196_p10), %v631_v0  ;;  %549 = vset.pattern.permute.xlu0 (!%p196_p10), %v632_v1  ;;  %v250_v5 = vld [vmem:[%s772_s0] sm:$0xff] (!%p196_p10)  ;;  %s228_s8 = sand.u32 (!%p196_p10), 1, %s613_s13  }
  0x10   : > { %255 = vperm.xlu0 (!%p196_p10), %549, %v252_v2   ;;  %s479_s9 = sshll.u32 (!%p196_p10), %s228_s8, 4  ;;  %s491_s10 = sshll.u32 (!%p196_p10), %s621_s15, 8 }
  0x11   : > { %s230_s11 = scalar_lea.vmem (!%p196_p10), [#allocation2], %s479_s9  ;;  %s725_s23 = scalar_lea.hbm (!%p196_p10), %s775_s3, %s491_s10 }
  0x12   : > { %s361_s18 = sshll.u32 (!%p196_p10), %s230_s11, 4  ;;  %s343_s26 = scalar_lea.sflag (!%p196_p10), [#allocation3], %s228_s8  ;;  %s727_s18 = int_to_ptr.vmem [resolvable:$true] %s361_s18 }
  0x13   : > { %s633_s27 = smov (!%p196_p10), [#allocation2]  }
  0x16   : > { %s241_s28 = scalar_select %p240_p11, %s621_s15, 1 }
  0x17   : > { %s551_s15 = scalar_lea.vmem %s727_s18, 256 }
  0x18   : > { %s490_s29 = sshll.u32 %s241_s28, 3  ;;  %p552_p12 = scmp.ne.s32.totalorder %s727_s18, %s551_s15 }
  0x19   : > { %s247_s5 = scalar_lea.vmem %s774_s2, %s490_s29  ;;  %s555_s28 = sshll.u32 %s633_s27, 4  ;;  %s556_s28 = int_to_ptr.vmem [resolvable:$false] %s555_s28 }
  0x1a   : > { %v251_v3 = vld [vmem:[%s247_s5] sm:$0xff]  ;;  %p553_p13 = pnand %p552_p12, %p694_p4  ;;  %s557_s29 = scalar_lea.vmem %s556_s28, 512 }
  0x1b   : > { %v259_v4 = vcombine.high %v251_v3, %v251_v3  ;;  %p558_p1 = scmp.lt.s32.totalorder %s727_s18, %s556_s28  ;;  %p559_p2 = scmp.lt.s32.totalorder %s557_s29, %s551_s15 }
  0x1c   : > { %p554_p0 = pneg %p553_p13 }
  0x1d   : > { %482 = vmatprep.subr.msk.mxu0 %vm264_vm0, %v259_v4  ;;  %p560_p3 = por %p559_p2, %p558_p1 }
  0x1e   : > { %483 = vmatpush1.msk.msra.mxu0 %vm264_vm0, %v251_v3 }
  0x1f   : > { %484 = vmatmul.mubr.msk.f32.vlgmr.msra.gmra.mrb[0].mxu0 %vm260_vm1, %v250_v5  ;;  %p561_p5 = pnand %p560_p3, %p554_p0 }
  0x8f   : > { %v256_v6 = vpop.permute.xlu0 %255 }
  0xf2   : > { %v335_v7 = vpop.f32.mrb[0].mxu0 }
  0xf3   : > { %v336_v8 = vadd.f32 %v335_v7, %v256_v6  ;;  %v337_v9 = vpop.f32.mrb[1].mxu0 }
  0xf4   : > { %v338_v10 = vadd.f32 %v337_v9, %v256_v6 }
  0xf5   : > { %340 = vst [vmem:[%s230_s11] sm:$0xff] %v336_v8 }
  0xf6   : > { %341 = vst [vmem:[%s230_s11 + $0x8] sm:$0xff] %v338_v10 }
  0xf7   : > { %564 = shalt.err (!%p561_p5)
}
  0xf8   : > { %s565_s30 = scalar_lea.hbm %s725_s23, 256  ;;  %s569_s6 = scalar_lea.hbm %s775_s3, 512 }
  0xf9   : > { %p566_p6 = scmp.ne.s32.totalorder %s725_s23, %s565_s30  ;;  %p570_p10 = scmp.lt.u32.totalorder %s725_s23, %s775_s3 }
  0xfa   : > { %p571_p11 = scmp.lt.u32.totalorder %s569_s6, %s565_s30  ;;  %p573_p13 = scmp.lt.u32.totalorder %s565_s30, %s725_s23 }
  0xfb   : > { %p567_p7 = pnand %p566_p6, %p694_p4 }
  0xfc   : > { %p572_p12 = por %p571_p11, %p570_p10 }
  0xfd   : > { %p568_p9 = pneg %p567_p7 }
  0xfe   : > { %p574_p0 = por %p573_p13, %p572_p12 }
 0x100   : > { %p575_p1 = pnand %p574_p0, %p568_p9 }
 0x102   : > { %578 = shalt.err (!%p575_p1)
}
 0x103   : > { %492 = dma.vmem_to_hbm [thread:$0]  (%p694_p4), %s727_s18, 256, %s725_s23, %s343_s26  }
 0x104 PF: > { %p498_p2 = scmp.ge.s32.totalorder %s629_s17, 2  ;;  %s373_s9 = sand.u32 1, %s609_s12  }
 0x105   : > { %s374_s10 = scalar_lea.sflag [#allocation3], %s373_s9 }
 0x106   : > { %p495_p3 = pnand %p498_p2, %p701_p8 }
 0x108   : > { %604 = dma.done.wait (!%p495_p3), %s374_s10, 256  }
 0x109   : > { %606 = vsyncadd (!%p495_p3), %s374_s10, 4294967040  ;;  %s16_s17 = sadd.s32 1, %s629_s17   ;;  %s778_s12 = smov %s613_s13 }
 0x10a   : > { %p13_p5 = scmp.ge.s32.totalorder %s16_s17, 4   ;;  %s779_s13 = smov %s617_s14 }
 0x10b   : > { %s780_s14 = smov %s707_s25  ;;  %s781_s15 = smov %s625_s16 }
 0x10c   : > { %s782_s16 = smov %s784_s20  ;;  %15 = sbr.rel (!%p13_p5) target bundleno = 4 (0x4), region = 73 }
 0x113   :  { %379 = vsyncpa [#allocation3], 1 }
 0x114   :  { %381 = vsyncpa [#allocation3 + $0x1], 1 }

</bundles_post_ra>
